<compile_context>
chip_gen: v6e
topology: v6e:2x2x1
jax: 0.10.0
libtpu: 0.0.40
codegen_flags: <defaults>
</compile_context>

<pallas_src>
import functools

import jax
import jax.numpy as jnp
from jax.experimental import pallas as pl
from jax.experimental.pallas import tpu as pltpu

BN_EPS = 1e-5
_MAX_T_TILE = 512  # output frames per grid step when tiling long sequences


def _plan_t_tiling(t_out, rf_rest, max_tile=_MAX_T_TILE):
    """Output-T tiling -> (t_tile, n_t, t_padded).

    Tiles are multiples of 128 (lane constraint) and at least as long as the receptive-field
    halo, so halo recompute stays a bounded fraction of each tile's work.  Ragged T is handled
    by zero-padding the input in the wrapper and slicing the output afterwards, so the grid
    never collapses to a single full-T tile for long sequences.
    """
    min_tile = max(128, -(-rf_rest // 128) * 128)
    if t_out <= max(2 * min_tile, 256):
        return t_out, 1, t_out                       # short clip: one full-T tile
    t_tile = min(max_tile, max(min_tile, (t_out // 2 // 128) * 128))
    n_t = -(-t_out // t_tile)
    return t_tile, n_t, n_t * t_tile


# ----------------------------------------------------------------------------
# The single fused kernel
# ----------------------------------------------------------------------------
def _fused_net_kernel(block_cfgs, t_tile, n_t, rf_rest, *refs):
    """Whole TemporalModel forward for one (batch, T-tile) grid step.

    refs = [x_im2col, w_expand, b_expand,
            (w1, b1, w2, b2) per residual block,
            w_shrink_T, b_shrink, out]
    Weights have BN scales pre-folded (bf16); biases are f32.  The activation chain is carried
    in f32; only MXU operands are cast to bf16.
    """
    n_blk = len(block_cfgs)
    x_ref, wexp_ref, bexp_ref = refs[:3]
    blk_refs = refs[3:3 + 4 * n_blk]
    wsh_ref, bsh_ref, o_ref = refs[3 + 4 * n_blk:]

    t0 = 0 if n_t == 1 else pl.multiple_of(pl.program_id(1) * t_tile, 128)
    L = t_tile + rf_rest                               # expand-output rows this tile needs

    # Expand conv (wrapper-side im2col -> one deep matmul) + folded-BN bias + ReLU.
    xw = x_ref[0, pl.ds(t0, L), :]                     # (L, K0*C_in) bf16
    a = jnp.dot(xw, wexp_ref[...], preferred_element_type=jnp.float32)
    a = jnp.maximum(a + bexp_ref[0], 0.0)              # (L, C) f32 activation carry

    for i, (K, dil, pad) in enumerate(block_cfgs):
        w1_ref, b1_ref, w2_ref, b2_ref = blk_refs[4 * i:4 * (i + 1)]
        L_out = L - 2 * pad
        a_bf = a.astype(jnp.bfloat16)
        # Dilated conv: K accumulating dots on directly-sliced taps (no concat round trip).
        acc = jnp.dot(a_bf[0:L_out, :], w1_ref[0], preferred_element_type=jnp.float32)
        for k in range(1, K):
            acc = acc + jnp.dot(a_bf[k * dil:k * dil + L_out, :], w1_ref[k],
                                preferred_element_type=jnp.float32)
        h = jnp.maximum(acc + b1_ref[0], 0.0)          # BN scale already folded into w1
        # 1x1 conv + folded-BN bias + ReLU; intermediate never leaves the chip.
        y = jnp.dot(h.astype(jnp.bfloat16), w2_ref[...], preferred_element_type=jnp.float32)
        y = jnp.maximum(y + b2_ref[0], 0.0)
        # Residual add, sliced from the carried f32 activation.
        a = a[pad:pad + L_out, :] + y
        L = L_out

    # Shrink 1x1 conv, lane-dense (3J_pad, t_tile) output: transposed-RHS matmul over channels.
    out = jax.lax.dot_general(wsh_ref[...], a.astype(jnp.bfloat16),
                              (((1,), (1,)), ((), ())),
                              preferred_element_type=jnp.float32)
    o_ref[0] = (out + bsh_ref[...]).astype(o_ref.dtype)


# ----------------------------------------------------------------------------
# Parameter prep (BN folding, weight layouts) + forward wrapper
# ----------------------------------------------------------------------------
def _fold_scale_bias(bn):
    s = bn["gamma"] / jnp.sqrt(bn["var"] + BN_EPS)
    b = bn["beta"] - bn["mean"] * s
    return s.astype(jnp.float32), b.astype(jnp.float32)


def _w_tap_major(w_oik, scale=None):
    """PyTorch (C_out, C_in, K) -> (K*C_in, C_out) bf16, BN scale folded in f32 first."""
    c_out, c_in, k = w_oik.shape
    w = jnp.transpose(w_oik, (2, 1, 0)).reshape(k * c_in, c_out)
    if scale is not None:
        w = w * scale[None, :]
    return w.astype(jnp.bfloat16)


def _w_kio(w_oik, scale=None):
    """PyTorch (C_out, C_in, K) -> (K, C_in, C_out) bf16, BN scale folded in f32 first."""
    w = jnp.transpose(w_oik, (2, 1, 0))
    if scale is not None:
        w = w * scale[None, None, :]
    return w.astype(jnp.bfloat16)


def temporal_model_forward(x_nct, params, filter_widths):
    """Fused Pallas forward.  x_nct: (B, C_in, T) PyTorch layout; returns (B, 3*J_out, T_out)."""
    B, c_in, T_in = x_nct.shape
    channels = params["expand_conv_w"].shape[0]
    K0 = filter_widths[0]

    # Static per-block config: (filter width, dilation, pad).
    block_cfgs = []
    next_dilation = K0
    for i in range(1, len(filter_widths)):
        K = filter_widths[i]
        block_cfgs.append((K, next_dilation, (K - 1) * next_dilation // 2))
        next_dilation *= K
    rf_rest = sum(2 * p for _, _, p in block_cfgs)
    T_exp = T_in - (K0 - 1)            # expand-conv output length
    T_out = T_exp - rf_rest            # final output length

    # Wrapper-side prep (all tiny): NCT -> channels-last bf16, im2col for the expand conv.
    x_cl = jnp.transpose(x_nct, (0, 2, 1)).astype(jnp.bfloat16)              # (B, T, C_in)
    x_taps = jnp.concatenate([x_cl[:, k:k + T_exp, :] for k in range(K0)], axis=-1)

    t_tile, n_t, T_pad = _plan_t_tiling(T_out, rf_rest)
    if T_pad > T_out:                  # ragged T: zero-pad, slice the output afterwards
        x_taps = jnp.pad(x_taps, ((0, 0), (0, T_pad - T_out), (0, 0)))
    T_win = T_pad + rf_rest            # rows of the resident im2col input

    # Fold BN scales into the conv weights (f32, before the bf16 cast); keep biases separate.
    s_e, b_e = _fold_scale_bias(params["expand_bn"])
    args = [x_taps, _w_tap_major(params["expand_conv_w"], s_e), b_e[None, :]]
    in_specs = [
        pl.BlockSpec((1, T_win, K0 * c_in), lambda b, t: (b, 0, 0)),   # resident per batch elem
        pl.BlockSpec((K0 * c_in, channels), lambda b, t: (0, 0)),      # weights DMA'd once
        pl.BlockSpec((1, channels), lambda b, t: (0, 0)),
    ]
    for i, (K, _, _) in enumerate(block_cfgs):
        s1, b1 = _fold_scale_bias(params["layers_bn"][2 * i])
        s2, b2 = _fold_scale_bias(params["layers_bn"][2 * i + 1])
        args += [_w_kio(params["layers_conv_w"][2 * i], s1), b1[None, :],
                 _w_tap_major(params["layers_conv_w"][2 * i + 1], s2), b2[None, :]]
        in_specs += [
            pl.BlockSpec((K, channels, channels), lambda b, t: (0, 0, 0)),
            pl.BlockSpec((1, channels), lambda b, t: (0, 0)),
            pl.BlockSpec((channels, channels), lambda b, t: (0, 0)),
            pl.BlockSpec((1, channels), lambda b, t: (0, 0)),
        ]

    # Shrink weights, pre-transposed to (3J, C) and row-padded to a sublane multiple so the
    # lane-dense output slab is aligned; the padded rows are sliced off below.
    c_sh = params["shrink_w"].shape[0]
    c_sh_pad = -(-c_sh // 8) * 8
    w_sh = jnp.pad(params["shrink_w"][:, :, 0], ((0, c_sh_pad - c_sh), (0, 0)))
    b_sh = jnp.pad(params["shrink_b"], (0, c_sh_pad - c_sh))[:, None]
    args += [w_sh.astype(jnp.bfloat16), b_sh.astype(jnp.float32)]
    in_specs += [pl.BlockSpec((c_sh_pad, channels), lambda b, t: (0, 0)),
                 pl.BlockSpec((c_sh_pad, 1), lambda b, t: (0, 0))]

    kernel = functools.partial(_fused_net_kernel, tuple(block_cfgs), t_tile, n_t, rf_rest)
    out = pl.pallas_call(
        kernel,
        out_shape=jax.ShapeDtypeStruct((B, c_sh_pad, T_pad), jnp.float32),
        grid=(B, n_t),
        in_specs=in_specs,
        out_specs=pl.BlockSpec((1, c_sh_pad, t_tile), lambda b, t: (b, 0, t)),
        compiler_params=pltpu.CompilerParams(
            dimension_semantics=("parallel", "parallel")),
    )(*args)

    # Drop channel / T padding; output is already in PyTorch (B, 3J, T) layout (lane-dense).
    return out[:, :c_sh, :T_out]


# ----------------------------------------------------------------------------
# Deterministic PyTorch-shaped parameters + pure-JAX reference
# ----------------------------------------------------------------------------
def init_params(key, in_channels, num_joints_out, filter_widths, channels):
    def nxt():
        nonlocal key
        key, sub = jax.random.split(key)
        return sub

    def conv_w(c_out, c_in, k):
        return 0.05 * jax.random.normal(nxt(), (c_out, c_in, k), jnp.float32)

    def bn_p(c):
        return {
            "gamma": 1.0 + 0.1 * jax.random.normal(nxt(), (c,), jnp.float32),
            "beta": 0.1 * jax.random.normal(nxt(), (c,), jnp.float32),
            "mean": 0.1 * jax.random.normal(nxt(), (c,), jnp.float32),
            "var": 1.0 + 0.1 * jnp.abs(jax.random.normal(nxt(), (c,), jnp.float32)),
        }

    params = {
        "expand_conv_w": conv_w(channels, in_channels, filter_widths[0]),
        "expand_bn": bn_p(channels),
        "layers_conv_w": [],
        "layers_bn": [],
        "shrink_w": conv_w(num_joints_out * 3, channels, 1),
        "shrink_b": 0.05 * jax.random.normal(nxt(), (num_joints_out * 3,), jnp.float32),
    }
    for i in range(1, len(filter_widths)):
        params["layers_conv_w"].append(conv_w(channels, channels, filter_widths[i]))
        params["layers_bn"].append(bn_p(channels))
        params["layers_conv_w"].append(conv_w(channels, channels, 1))
        params["layers_bn"].append(bn_p(channels))
    return params


def temporal_model_reference(x_nct, params, filter_widths):
    """Pure-JAX f32 reference using lax.conv_general_dilated (matches PyTorch eval)."""
    def conv1d(x, w, dilation=1):
        return jax.lax.conv_general_dilated(
            x, w, window_strides=(1,), padding="VALID",
            rhs_dilation=(dilation,), dimension_numbers=("NCH", "OIH", "NCH"))

    def bn(x, p):
        s = p["gamma"] / jnp.sqrt(p["var"] + BN_EPS)
        b = p["beta"] - p["mean"] * s
        return x * s[None, :, None] + b[None, :, None]

    relu = jax.nn.relu
    x = relu(bn(conv1d(x_nct, params["expand_conv_w"]), params["expand_bn"]))
    next_dilation = filter_widths[0]
    for i in range(1, len(filter_widths)):
        pad = (filter_widths[i] - 1) * next_dilation // 2
        res = x[:, :, pad: x.shape[2] - pad]
        x = relu(bn(conv1d(x, params["layers_conv_w"][2 * (i - 1)], next_dilation),
                    params["layers_bn"][2 * (i - 1)]))
        x = res + relu(bn(conv1d(x, params["layers_conv_w"][2 * (i - 1) + 1]),
                          params["layers_bn"][2 * (i - 1) + 1]))
        next_dilation *= filter_widths[i]
    x = conv1d(x, params["shrink_w"]) + params["shrink_b"][None, :, None]
    return x


if __name__ == "__main__":
    # Small config: in_channels=32 (e.g. 16 joints * 2D), 4 output joints,
    # filter_widths=[3, 3] (receptive field 9), channels=128.
    in_channels, num_joints_out, channels = 32, 4, 128
    filter_widths = [3, 3]

    key = jax.random.PRNGKey(0)
    pkey, xkey, xkey2 = jax.random.split(key, 3)
    params = init_params(pkey, in_channels, num_joints_out, filter_widths, channels)

    # Test 1: small clip (single full-T tile path), B=2.
    B, T = 2, 16
    x = jax.random.normal(xkey, (B, in_channels, T), jnp.float32)       # PyTorch NCT layout
    out = jax.block_until_ready(temporal_model_forward(x, params, filter_widths))
    ref = jax.block_until_ready(temporal_model_reference(x, params, filter_widths))
    assert out.shape == (B, num_joints_out * 3, T - 2 * (1 + 3)), out.shape
    err = float(jnp.max(jnp.abs(out - ref)))
    assert jnp.allclose(out, ref, atol=5e-2, rtol=5e-2), err            # bf16 MXU operands

    # Test 2: longer ragged clip exercising the multi-tile path (zero-padded T, dynamic t0), B=1.
    T2 = 308
    x2 = jax.random.normal(xkey2, (1, in_channels, T2), jnp.float32)
    out2 = jax.block_until_ready(temporal_model_forward(x2, params, filter_widths))
    ref2 = jax.block_until_ready(temporal_model_reference(x2, params, filter_widths))
    assert out2.shape == (1, num_joints_out * 3, T2 - 2 * (1 + 3)), out2.shape
    err2 = float(jnp.max(jnp.abs(out2 - ref2)))
    assert jnp.allclose(out2, ref2, atol=5e-2, rtol=5e-2), err2

    print("KERNEL_OK")
</pallas_src>

<mosaic_0001>
module attributes {stable_mosaic.version = 11 : i64} {
  func.func @_fused_net_kernel(%arg0: i32, %arg1: i32, %arg2: memref<1x14x96xbf16, #tpu.memory_space<vmem>>, %arg3: memref<96x128xbf16, #tpu.memory_space<vmem>>, %arg4: memref<1x128xf32, #tpu.memory_space<vmem>>, %arg5: memref<3x128x128xbf16, #tpu.memory_space<vmem>>, %arg6: memref<1x128xf32, #tpu.memory_space<vmem>>, %arg7: memref<128x128xbf16, #tpu.memory_space<vmem>>, %arg8: memref<1x128xf32, #tpu.memory_space<vmem>>, %arg9: memref<16x128xbf16, #tpu.memory_space<vmem>>, %arg10: memref<16x1xf32, #tpu.memory_space<vmem>>, %arg11: memref<1x16x8xf32, #tpu.memory_space<vmem>>) attributes {dimension_semantics = [#tpu.dimension_semantics<parallel>, #tpu.dimension_semantics<parallel>], iteration_bounds = array<i64: 2, 1>, scalar_prefetch = 0 : i64, scratch_operands = 0 : i64, tpu.core_type = #tpu.core_type<tc>, window_params = [{transform_indices = @transform_0, window_bounds = array<i64: 1, 14, 96>}, {pipeline_mode = #tpu.pipeline_mode<synchronous>, transform_indices = @transform_1, window_bounds = array<i64: 96, 128>}, {pipeline_mode = #tpu.pipeline_mode<synchronous>, transform_indices = @transform_2, window_bounds = array<i64: 1, 128>}, {pipeline_mode = #tpu.pipeline_mode<synchronous>, transform_indices = @transform_3, window_bounds = array<i64: 3, 128, 128>}, {pipeline_mode = #tpu.pipeline_mode<synchronous>, transform_indices = @transform_4, window_bounds = array<i64: 1, 128>}, {pipeline_mode = #tpu.pipeline_mode<synchronous>, transform_indices = @transform_5, window_bounds = array<i64: 128, 128>}, {pipeline_mode = #tpu.pipeline_mode<synchronous>, transform_indices = @transform_6, window_bounds = array<i64: 1, 128>}, {pipeline_mode = #tpu.pipeline_mode<synchronous>, transform_indices = @transform_7, window_bounds = array<i64: 16, 128>}, {pipeline_mode = #tpu.pipeline_mode<synchronous>, transform_indices = @transform_8, window_bounds = array<i64: 16, 1>}, {transform_indices = @transform_9, window_bounds = array<i64: 1, 16, 8>}]} {
    %c0 = arith.constant 0 : index
    %c0_0 = arith.constant 0 : index
    %c0_1 = arith.constant 0 : index
    %0 = vector.load %arg2[%c0, %c0_0, %c0_1] : memref<1x14x96xbf16, #tpu.memory_space<vmem>>, vector<1x14x96xbf16>
    %1 = vector.shape_cast %0 : vector<1x14x96xbf16> to vector<14x96xbf16>
    %c0_2 = arith.constant 0 : index
    %c0_3 = arith.constant 0 : index
    %2 = vector.load %arg3[%c0_2, %c0_3] : memref<96x128xbf16, #tpu.memory_space<vmem>>, vector<96x128xbf16>
    %cst = arith.constant dense<0.000000e+00> : vector<14x128xf32>
    %3 = tpu.matmul %1, %2, %cst {dimension_numbers = #tpu.dot_dimension_numbers<[1], [0], [0], [1], [0, 0, 1, 1], [], []>} : vector<14x96xbf16>, vector<96x128xbf16>, vector<14x128xf32> -> vector<14x128xf32>
    %c0_4 = arith.constant 0 : index
    %c0_5 = arith.constant 0 : index
    %4 = vector.load %arg4[%c0_4, %c0_5] : memref<1x128xf32, #tpu.memory_space<vmem>>, vector<1x128xf32>
    %5 = vector.shape_cast %4 : vector<1x128xf32> to vector<128xf32>
    %6 = vector.shape_cast %5 : vector<128xf32> to vector<1x128xf32>
    %7 = vector.broadcast %6 : vector<1x128xf32> to vector<14x128xf32>
    %8 = arith.addf %3, %7 : vector<14x128xf32>
    %cst_6 = arith.constant 0.000000e+00 : f32
    %9 = vector.broadcast %cst_6 : f32 to vector<14x128xf32>
    %10 = arith.maximumf %8, %9 : vector<14x128xf32>
    %11 = arith.truncf %10 : vector<14x128xf32> to vector<14x128xbf16>
    %12 = vector.extract_strided_slice %11 {offsets = [0, 0], sizes = [8, 128], strides = [1, 1]} : vector<14x128xbf16> to vector<8x128xbf16>
    %c0_7 = arith.constant 0 : index
    %c0_8 = arith.constant 0 : index
    %c0_9 = arith.constant 0 : index
    %13 = vector.load %arg5[%c0_7, %c0_8, %c0_9] : memref<3x128x128xbf16, #tpu.memory_space<vmem>>, vector<1x128x128xbf16>
    %14 = vector.shape_cast %13 : vector<1x128x128xbf16> to vector<128x128xbf16>
    %cst_10 = arith.constant dense<0.000000e+00> : vector<8x128xf32>
    %15 = tpu.matmul %12, %14, %cst_10 {dimension_numbers = #tpu.dot_dimension_numbers<[1], [0], [0], [1], [0, 0, 1, 1], [], []>} : vector<8x128xbf16>, vector<128x128xbf16>, vector<8x128xf32> -> vector<8x128xf32>
    %16 = vector.extract_strided_slice %11 {offsets = [3, 0], sizes = [8, 128], strides = [1, 1]} : vector<14x128xbf16> to vector<8x128xbf16>
    %c1 = arith.constant 1 : index
    %c0_11 = arith.constant 0 : index
    %c0_12 = arith.constant 0 : index
    %17 = vector.load %arg5[%c1, %c0_11, %c0_12] : memref<3x128x128xbf16, #tpu.memory_space<vmem>>, vector<1x128x128xbf16>
    %18 = vector.shape_cast %17 : vector<1x128x128xbf16> to vector<128x128xbf16>
    %cst_13 = arith.constant dense<0.000000e+00> : vector<8x128xf32>
    %19 = tpu.matmul %16, %18, %cst_13 {dimension_numbers = #tpu.dot_dimension_numbers<[1], [0], [0], [1], [0, 0, 1, 1], [], []>} : vector<8x128xbf16>, vector<128x128xbf16>, vector<8x128xf32> -> vector<8x128xf32>
    %20 = arith.addf %15, %19 : vector<8x128xf32>
    %21 = vector.extract_strided_slice %11 {offsets = [6, 0], sizes = [8, 128], strides = [1, 1]} : vector<14x128xbf16> to vector<8x128xbf16>
    %c2 = arith.constant 2 : index
    %c0_14 = arith.constant 0 : index
    %c0_15 = arith.constant 0 : index
    %22 = vector.load %arg5[%c2, %c0_14, %c0_15] : memref<3x128x128xbf16, #tpu.memory_space<vmem>>, vector<1x128x128xbf16>
    %23 = vector.shape_cast %22 : vector<1x128x128xbf16> to vector<128x128xbf16>
    %cst_16 = arith.constant dense<0.000000e+00> : vector<8x128xf32>
    %24 = tpu.matmul %21, %23, %cst_16 {dimension_numbers = #tpu.dot_dimension_numbers<[1], [0], [0], [1], [0, 0, 1, 1], [], []>} : vector<8x128xbf16>, vector<128x128xbf16>, vector<8x128xf32> -> vector<8x128xf32>
    %25 = arith.addf %20, %24 : vector<8x128xf32>
    %c0_17 = arith.constant 0 : index
    %c0_18 = arith.constant 0 : index
    %26 = vector.load %arg6[%c0_17, %c0_18] : memref<1x128xf32, #tpu.memory_space<vmem>>, vector<1x128xf32>
    %27 = vector.shape_cast %26 : vector<1x128xf32> to vector<128xf32>
    %28 = vector.shape_cast %27 : vector<128xf32> to vector<1x128xf32>
    %29 = vector.broadcast %28 : vector<1x128xf32> to vector<8x128xf32>
    %30 = arith.addf %25, %29 : vector<8x128xf32>
    %cst_19 = arith.constant 0.000000e+00 : f32
    %31 = vector.broadcast %cst_19 : f32 to vector<8x128xf32>
    %32 = arith.maximumf %30, %31 : vector<8x128xf32>
    %33 = arith.truncf %32 : vector<8x128xf32> to vector<8x128xbf16>
    %c0_20 = arith.constant 0 : index
    %c0_21 = arith.constant 0 : index
    %34 = vector.load %arg7[%c0_20, %c0_21] : memref<128x128xbf16, #tpu.memory_space<vmem>>, vector<128x128xbf16>
    %cst_22 = arith.constant dense<0.000000e+00> : vector<8x128xf32>
    %35 = tpu.matmul %33, %34, %cst_22 {dimension_numbers = #tpu.dot_dimension_numbers<[1], [0], [0], [1], [0, 0, 1, 1], [], []>} : vector<8x128xbf16>, vector<128x128xbf16>, vector<8x128xf32> -> vector<8x128xf32>
    %c0_23 = arith.constant 0 : index
    %c0_24 = arith.constant 0 : index
    %36 = vector.load %arg8[%c0_23, %c0_24] : memref<1x128xf32, #tpu.memory_space<vmem>>, vector<1x128xf32>
    %37 = vector.shape_cast %36 : vector<1x128xf32> to vector<128xf32>
    %38 = vector.shape_cast %37 : vector<128xf32> to vector<1x128xf32>
    %39 = vector.broadcast %38 : vector<1x128xf32> to vector<8x128xf32>
    %40 = arith.addf %35, %39 : vector<8x128xf32>
    %cst_25 = arith.constant 0.000000e+00 : f32
    %41 = vector.broadcast %cst_25 : f32 to vector<8x128xf32>
    %42 = arith.maximumf %40, %41 : vector<8x128xf32>
    %43 = vector.extract_strided_slice %10 {offsets = [3, 0], sizes = [8, 128], strides = [1, 1]} : vector<14x128xf32> to vector<8x128xf32>
    %44 = arith.addf %43, %42 : vector<8x128xf32>
    %c0_26 = arith.constant 0 : index
    %c0_27 = arith.constant 0 : index
    %45 = vector.load %arg9[%c0_26, %c0_27] : memref<16x128xbf16, #tpu.memory_space<vmem>>, vector<16x128xbf16>
    %46 = arith.truncf %44 : vector<8x128xf32> to vector<8x128xbf16>
    %cst_28 = arith.constant dense<0.000000e+00> : vector<16x8xf32>
    %47 = tpu.matmul %45, %46, %cst_28 {dimension_numbers = #tpu.dot_dimension_numbers<[1], [1], [0], [0], [0, 0, 1, 0], [], []>} : vector<16x128xbf16>, vector<8x128xbf16>, vector<16x8xf32> -> vector<16x8xf32>
    %c0_29 = arith.constant 0 : index
    %c0_30 = arith.constant 0 : index
    %48 = vector.load %arg10[%c0_29, %c0_30] : memref<16x1xf32, #tpu.memory_space<vmem>>, vector<16x1xf32>
    %49 = vector.broadcast %48 : vector<16x1xf32> to vector<16x8xf32>
    %50 = arith.addf %47, %49 : vector<16x8xf32>
    %c0_31 = arith.constant 0 : index
    %c0_32 = arith.constant 0 : index
    %c0_33 = arith.constant 0 : index
    %51 = vector.load %arg11[%c0_31, %c0_32, %c0_33] : memref<1x16x8xf32, #tpu.memory_space<vmem>>, vector<1x16x8xf32>
    %52 = vector.shape_cast %51 : vector<1x16x8xf32> to vector<16x8xf32>
    %53 = vector.shape_cast %50 : vector<16x8xf32> to vector<1x16x8xf32>
    tpu.vector_store %arg11[%c0_31, %c0_32, %c0_33], %53 {strides = array<i32>} : memref<1x16x8xf32, #tpu.memory_space<vmem>>, vector<1x16x8xf32>,
    return
  }
  func.func @transform_0(%arg0: i32, %arg1: i32) -> (i32, i32, i32) {
    %c0_i32 = arith.constant 0 : i32
    %c0_i32_0 = arith.constant 0 : i32
    %c0_i32_1 = arith.constant 0 : i32
    return %arg0, %c0_i32, %c0_i32_0 : i32, i32, i32
  }
  func.func @transform_1(%arg0: i32, %arg1: i32) -> (i32, i32) {
    %c0_i32 = arith.constant 0 : i32
    %c0_i32_0 = arith.constant 0 : i32
    %c0_i32_1 = arith.constant 0 : i32
    return %c0_i32, %c0_i32_0 : i32, i32
  }
  func.func @transform_2(%arg0: i32, %arg1: i32) -> (i32, i32) {
    %c0_i32 = arith.constant 0 : i32
    %c0_i32_0 = arith.constant 0 : i32
    %c0_i32_1 = arith.constant 0 : i32
    return %c0_i32, %c0_i32_0 : i32, i32
  }
  func.func @transform_3(%arg0: i32, %arg1: i32) -> (i32, i32, i32) {
    %c0_i32 = arith.constant 0 : i32
    %c0_i32_0 = arith.constant 0 : i32
    %c0_i32_1 = arith.constant 0 : i32
    %c0_i32_2 = arith.constant 0 : i32
    return %c0_i32, %c0_i32_0, %c0_i32_1 : i32, i32, i32
  }
  func.func @transform_4(%arg0: i32, %arg1: i32) -> (i32, i32) {
    %c0_i32 = arith.constant 0 : i32
    %c0_i32_0 = arith.constant 0 : i32
    %c0_i32_1 = arith.constant 0 : i32
    return %c0_i32, %c0_i32_0 : i32, i32
  }
  func.func @transform_5(%arg0: i32, %arg1: i32) -> (i32, i32) {
    %c0_i32 = arith.constant 0 : i32
    %c0_i32_0 = arith.constant 0 : i32
    %c0_i32_1 = arith.constant 0 : i32
    return %c0_i32, %c0_i32_0 : i32, i32
  }
  func.func @transform_6(%arg0: i32, %arg1: i32) -> (i32, i32) {
    %c0_i32 = arith.constant 0 : i32
    %c0_i32_0 = arith.constant 0 : i32
    %c0_i32_1 = arith.constant 0 : i32
    return %c0_i32, %c0_i32_0 : i32, i32
  }
  func.func @transform_7(%arg0: i32, %arg1: i32) -> (i32, i32) {
    %c0_i32 = arith.constant 0 : i32
    %c0_i32_0 = arith.constant 0 : i32
    %c0_i32_1 = arith.constant 0 : i32
    return %c0_i32, %c0_i32_0 : i32, i32
  }
  func.func @transform_8(%arg0: i32, %arg1: i32) -> (i32, i32) {
    %c0_i32 = arith.constant 0 : i32
    %c0_i32_0 = arith.constant 0 : i32
    %c0_i32_1 = arith.constant 0 : i32
    return %c0_i32, %c0_i32_0 : i32, i32
  }
  func.func @transform_9(%arg0: i32, %arg1: i32) -> (i32, i32, i32) {
    %c0_i32 = arith.constant 0 : i32
    %c0_i32_0 = arith.constant 0 : i32
    return %arg0, %c0_i32, %arg1 : i32, i32, i32
  }
}

</mosaic_0001>

<bundles_post_ra>
// kernel: tpu_custom_call.1
= control target key start
LH: loop header
LB: loop body
LE: loop exit
PB: predicated region body
PF: predicated region fallthrough
CT: control target
= control target key end

     0   :  { %14 = vsyncpa [#allocation3], 0  ;;  %s1953_s0 = inlined_call_operand.vmem [shape: bf16[2,14,96], index: 0, kind: input, shape index: {}]   ;;  %s1954_s1 = inlined_call_operand.vmem [shape: bf16[96,128], index: 1, kind: input, shape index: {}]   ;;  %s1955_s2 = inlined_call_operand.hbm [shape: f32[1,128], index: 2, kind: input, shape index: {}]   ;;  %s1956_s3 = inlined_call_operand.hbm [shape: bf16[3,128,128], index: 3, kind: input, shape index: {}]   ;;  %s1957_s4 = inlined_call_operand.hbm [shape: f32[1,128], index: 4, kind: input, shape index: {}]   ;;  %s1958_s5 = inlined_call_operand.hbm [shape: bf16[128,128], index: 5, kind: input, shape index: {}]   ;;  %s1959_s6 = inlined_call_operand.hbm [shape: f32[1,128], index: 6, kind: input, shape index: {}]   ;;  %s1960_s7 = inlined_call_operand.vmem [shape: bf16[16,128], index: 7, kind: input, shape index: {}]   ;;  %s1961_s8 = inlined_call_operand.vmem [shape: f32[16,1], index: 8, kind: input, shape index: {}]   ;;  %s1962_s9 = inlined_call_operand.vmem [shape: f32[2,16,8], index: 9, kind: output, shape index: {}]  }
   0x1   :  { %15 = vsyncpa [#allocation5], 0 }
   0x2   :  { %16 = vsyncpa [#allocation8], 0  ;;  %s1748_s30 = smov 0   ;;  %s1750_s10 = smov 0  }
   0x3   :  { %s1752_s11 = smov 0  }
   0x4 LB: > { %s1688_s12 = smov [#allocation4]   ;;  %s1187_s14 = sadd.s32 4294967295, %s1686_s11   ;;  %s1686_s11 = sphi %s1752_s11, %s22_s11   ;;  %s1682_s10 = sphi %s1750_s10, %s1971_s10   ;;  %s1678_s30 = sphi %s1748_s30, %s1970_s30  }
   0x5   : > { %s287_s13 = sshll.u32 %s1688_s12, 4  ;;  %p1189_p0 = scmp.ge.s32.totalorder %s1686_s11, 1  ;;  %s288_s13 = int_to_ptr.vmem [resolvable:$true] %s287_s13 }
   0x6   : > { %p261_p1 = scmp.lt.s32.totalorder %s1686_s11, 3  ;;  %p1766_p2 = scmp.eq.s32.totalorder %s1187_s14, 0 }
   0x7   : > { %s1689_s17 = smov [#allocation7]   ;;  %s34_s20 = sadd.s32 1, %s1682_s10 }
   0x8   : > { %s1965_s15 = scalar_select %p1766_p2, 1, 0 }
   0x9   : > { %p1770_p3 = pnand %p1189_p0, %p261_p1  ;;  %s311_s18 = sshll.u32 %s1689_s17, 4  ;;  %s312_s18 = int_to_ptr.vmem [resolvable:$true] %s311_s18 }
   0xa   : > { %s1533_s22 = scalar_lea.vmem %s288_s13, 3072  ;;  %p1541_p10 = scmp.lt.s32.totalorder %s288_s13, %s288_s13 }
   0xb   : > { %p1421_p4 = pneg %p1770_p3  ;;  %p1534_p7 = scmp.ne.s32.totalorder %s288_s13, %s1533_s22 }
   0xc   : > { %p1542_p11 = scmp.lt.s32.totalorder %s1533_s22, %s1533_s22 }
   0xd   : > { %p1778_p5 = pnand %p1766_p2, %p1421_p4 }
   0xe   : > { %p1543_p12 = por %p1542_p11, %p1541_p10 }
   0xf   : > { %p1785_p6 = pneg %p1778_p5 }
  0x11   : > { %p1536_p8 = pnand %p1534_p7, %p1785_p6 }
  0x13   : > { %p1537_p9 = pneg %p1536_p8 }
  0x15   : > { %p1544_p13 = pnand %p1543_p12, %p1537_p9 }
  0x17   : > { %1547 = shalt.err (!%p1544_p13)
}
  0x18   : > { %s1690_s23 = smov 64   ;;  %s1691_s24 = smov 4  }
  0x19   : > { %1427 = dma.hbm_to_vmem [thread:$0]  (!%p1778_p5), %s1956_s3, 3072, %s288_s13, [#allocation5], %s1690_s23, %s1690_s23, %s1691_s24  }
  0x1a   : > { %s1559_s27 = scalar_lea.vmem %s312_s18, 1024  ;;  %p1567_p7 = scmp.lt.s32.totalorder %s312_s18, %s312_s18 }
  0x1b   : > { %p1560_p0 = scmp.ne.s32.totalorder %s312_s18, %s1559_s27  ;;  %p1568_p8 = scmp.lt.s32.totalorder %s1559_s27, %s1559_s27 }
  0x1d   : > { %p1562_p1 = pnand %p1560_p0, %p1785_p6  ;;  %p1569_p2 = por %p1568_p8, %p1567_p7 }
  0x1f   : > { %p1563_p4 = pneg %p1562_p1 }
  0x21   : > { %p1570_p10 = pnand %p1569_p2, %p1563_p4 }
  0x23   : > { %1573 = shalt.err (!%p1570_p10)
}
  0x24   : > { %1433 = dma.hbm_to_vmem [thread:$0]  (!%p1778_p5), %s1958_s5, 1024, %s312_s18, [#allocation8], %s1690_s23, %s1690_s23, %s1691_s24  }
  0x25   : > { %p36_p9 = scmp.ge.s32.totalorder %s34_s20, 2  ;;  %s1692_s12 = smov [#allocation2]  }
  0x26   : > { %s277_s13 = sshll.u32 %s1692_s12, 4  ;;  %s1693_s14 = smov [#allocation6]   ;;  %s278_s13 = int_to_ptr.vmem [resolvable:$true] %s277_s13 }
  0x27   : > { %s1973_s20 = smov (%p36_p9, %s34_s20), 0  ;;  %s301_s17 = sshll.u32 %s1693_s14, 4  ;;  %s302_s17 = int_to_ptr.vmem [resolvable:$true] %s301_s17 }
  0x28   : > { %s1585_s22 = scalar_lea.vmem %s278_s13, 16  ;;  %s1592_s25 = scalar_lea.vmem %s278_s13, 32 }
  0x29   : > { %p1586_p11 = scmp.ne.s32.totalorder %s278_s13, %s1585_s22  ;;  %p1593_p13 = scmp.lt.s32.totalorder %s278_s13, %s278_s13 }
  0x2a   : > { %p1594_p0 = scmp.lt.s32.totalorder %s1592_s25, %s1585_s22 }
  0x2b   : > { %p1588_p2 = pnand %p1586_p11, %p1785_p6 }
  0x2c   : > { %p1595_p1 = por %p1594_p0, %p1593_p13 }
  0x2d   : > { %p1589_p12 = pneg %p1588_p2 }
  0x2f   : > { %p1596_p4 = pnand %p1595_p1, %p1589_p12 }
  0x31   : > { %1599 = shalt.err (!%p1596_p4)
}
  0x32   : > { %1424 = dma.hbm_to_vmem [thread:$0]  (!%p1778_p5), %s1955_s2, 16, %s278_s13, [#allocation3]  }
  0x33   : > { %s1611_s24 = scalar_lea.vmem %s302_s17, 16  ;;  %s1618_s26 = scalar_lea.vmem %s302_s17, 32 }
  0x34   : > { %p1612_p7 = scmp.ne.s32.totalorder %s302_s17, %s1611_s24  ;;  %p1619_p9 = scmp.lt.s32.totalorder %s302_s17, %s302_s17 }
  0x35   : > { %p1620_p11 = scmp.lt.s32.totalorder %s1618_s26, %s1611_s24 }
  0x36   : > { %p1614_p8 = pnand %p1612_p7, %p1785_p6 }
  0x37   : > { %p1621_p2 = por %p1620_p11, %p1619_p9 }
  0x38   : > { %p1615_p10 = pneg %p1614_p8 }
  0x3a   : > { %p1622_p13 = pnand %p1621_p2, %p1615_p10 }
  0x3c   : > { %1625 = shalt.err (!%p1622_p13)
}
  0x3d   : > { %1430 = dma.hbm_to_vmem [thread:$0]  (!%p1778_p5), %s1957_s4, 16, %s302_s17, [#allocation5]  }
  0x3e   : > { %s1694_s29 = smov [#allocation9]  }
  0x3f   : > { %s325_s12 = sshll.u32 %s1694_s29, 4  ;;  %s326_s12 = int_to_ptr.vmem [resolvable:$true] %s325_s12 }
  0x40   : > { %s1637_s13 = scalar_lea.vmem %s326_s12, 16  ;;  %s1644_s14 = scalar_lea.vmem %s326_s12, 32 }
  0x41   : > { %p1638_p12 = scmp.ne.s32.totalorder %s326_s12, %s1637_s13  ;;  %p1645_p4 = scmp.lt.s32.totalorder %s326_s12, %s326_s12 }
  0x42   : > { %p1646_p7 = scmp.lt.s32.totalorder %s1644_s14, %s1637_s13 }
  0x43   : > { %p1640_p0 = pnand %p1638_p12, %p1785_p6 }
  0x44   : > { %p1647_p8 = por %p1646_p7, %p1645_p4 }
  0x45   : > { %p1641_p1 = pneg %p1640_p0 }
  0x47   : > { %p1648_p10 = pnand %p1647_p8, %p1641_p1 }
  0x49   : > { %1651 = shalt.err (!%p1648_p10)
}
  0x4a   : > { %1436 = dma.hbm_to_vmem [thread:$0]  (!%p1778_p5), %s1959_s6, 16, %s326_s12, [#allocation8]  }
  0x4b   : > { %352 = sbr.rel (%p1770_p3) target bundleno = 969 (0x3c9), region = 56  ;;  %p1969_p9 = scmp.ne.s32.totalorder (!%p1770_p3), %s1965_s15, 0 }
  0x50   : > { %1665 = dma.done.wait (%p1969_p9), [#allocation3], 16  }
  0x51   : > { %1667 = vsyncadd (%p1969_p9), [#allocation3], 4294967280 }
  0x52   : > { %1669 = dma.done.wait (%p1969_p9), [#allocation5], 3088  }
  0x53   : > { %1671 = vsyncadd (%p1969_p9), [#allocation5], 4294964208 }
  0x54   : > { %1673 = dma.done.wait (%p1969_p9), [#allocation8], 1040  }
  0x55   : > { %1675 = vsyncadd (%p1969_p9), [#allocation8], 4294966256  ;;  %v1695_v0 = vmov 0.0   ;;  %vm1696_vm0 = vmmov 0   ;;  %p407_p3 = scmp.lt.s32.totalorder %s1678_s30, 1  ;;  %v1482_v1 = vld [vmem:[%s1954_s1 + $0x28] sm:$0xff]  }
  0x56   : > { %1299 = vmatprep.subr.bf16.mxu0 %v1695_v0  ;;  %1311 = vmatprep.mubr.msk.bf16.mxu0 %vm1696_vm0, %v1695_v0  ;;  %v1483_v2 = vld [vmem:[%s1954_s1 + $0x20] sm:$0xff]   ;;  %v1484_v3 = vld [vmem:[%s1954_s1 + $0x18] sm:$0xff]   ;;  %v1485_v5 = vld [vmem:[%s1954_s1 + $0x10] sm:$0xff]   ;;  %vm483_vm1 = vcmask 785408   ;;  %vm1056_vm2 = vcmask 64512  }
  0x57   : > { %1315 = vmatprep.subr.bf16.mxu1 %v1695_v0  ;;  %1331 = vmatprep.mubr.msk.bf16.mxu1 %vm1696_vm0, %v1695_v0  ;;  %s1975_s30 = smov (!%p407_p3, %s1678_s30), 1  ;;  %v1491_v4 = vld [vmem:[#allocation4 + $0x78] sm:$0xff]   ;;  %v1493_v6 = vld [vmem:[#allocation4 + $0x70] sm:$0xff]   ;;  %v1486_v7 = vld [vmem:[%s1954_s1 + $0x8] sm:$0xff]  }
  0x58   : > { %1300 = vmatpush3.bf16.msra.mxu0 %v1482_v1  ;;  %s1252_s17 = sshll.u32 %s1975_s30, 3  ;;  %1316 = vmatpush3.bf16.msra.mxu1 %v1491_v4  ;;  %v1495_v8 = vld [vmem:[#allocation4 + $0x68] sm:$0xff]   ;;  %v1487_v9 = vld [vmem:[%s1954_s1] sm:$0xff]   ;;  %v1490_v13 = vld [vmem:[#allocation4 + $0x30] sm:$0xff]   ;;  %s1253_s18 = sshll.u32 %s1975_s30, 4 }
  0x59   : > { %1301 = vmatprep.subr.bf16.mxu0 %v1695_v0  ;;  %s411_s24 = scalar_lea.vmem %s1953_s0, %s1252_s17  ;;  %1317 = vmatprep.subr.bf16.mxu1 %v1695_v0  ;;  %v1497_v10 = vld [vmem:[#allocation4 + $0x60] sm:$0xff]   ;;  %v1489_v12 = vld [vmem:[#allocation4 + $0x38] sm:$0xff]   ;;  %v1492_v14 = vld [vmem:[#allocation4 + $0x28] sm:$0xff]   ;;  %s419_s26 = scalar_lea.vmem %s1962_s9, %s1253_s18 }
  0x5a   : > { %v1488_v11 = vld [vmem:[%s411_s24] sm:$0x7f]   ;;  %v1498_v17 = vld [vmem:[#allocation4 + $0x10] sm:$0xff]   ;;  %v1500_v19 = vld [vmem:[#allocation4 + $0x8] sm:$0xff]  }
  0x5b   : > { %v1494_v15 = vld [vmem:[#allocation4 + $0x20] sm:$0xff]   ;;  %v1496_v16 = vld [vmem:[#allocation4 + $0x18] sm:$0xff]   ;;  %v1501_v20 = vld [vmem:[#allocation4 + $0x50] sm:$0xff]  }
  0x5c   : > { %1302 = vmatpush3.bf16.msra.mxu0 %v1483_v2  ;;  %1318 = vmatpush3.bf16.msra.mxu1 %v1493_v6  ;;  %v1499_v18 = vld [vmem:[#allocation4 + $0x58] sm:$0xff]   ;;  %v1502_v21 = vld [vmem:[#allocation4] sm:$0xff]   ;;  %v1503_v22 = vld [vmem:[#allocation4 + $0x48] sm:$0xff]  }
  0x5d   : > { %1303 = vmatprep.subr.bf16.mxu0 %v1695_v0  ;;  %1319 = vmatprep.subr.bf16.mxu1 %v1695_v0  ;;  %v1504_v23 = vld [vmem:[#allocation4 + $0x40] sm:$0xff]   ;;  %v1206_v24 = vld [vmem:[#allocation2] ss:$0 sm:$0xff]  ;;  %v1506_v40 = vld [vmem:[#allocation4 + $0xb0] sm:$0xff]  }
  0x5e   : > { %v1505_v38 = vld [vmem:[#allocation4 + $0xb8] sm:$0xff]   ;;  %v1507_v41 = vld [vmem:[#allocation4 + $0xa8] sm:$0xff]   ;;  %v1508_v42 = vld [vmem:[#allocation4 + $0xa0] sm:$0xff]  }
  0x5f   : > { %v1509_v43 = vld [vmem:[#allocation4 + $0x98] sm:$0xff]   ;;  %v1510_v44 = vld [vmem:[#allocation4 + $0x90] sm:$0xff]   ;;  %v1511_v45 = vld [vmem:[#allocation4 + $0x88] sm:$0xff]  }
  0x60   : > { %1304 = vmatpush3.bf16.msra.mxu0 %v1484_v3  ;;  %1320 = vmatpush3.bf16.msra.mxu1 %v1495_v8  ;;  %v1512_v46 = vld [vmem:[#allocation4 + $0x80] sm:$0xff]   ;;  %v1514_v49 = vld [vmem:[#allocation7 + $0x30] sm:$0xff]   ;;  %v1515_v50 = vld [vmem:[#allocation7 + $0x28] sm:$0xff]  }
  0x61   : > { %1305 = vmatprep.subr.bf16.mxu0 %v1695_v0  ;;  %1321 = vmatprep.subr.bf16.mxu1 %v1695_v0  ;;  %v1513_v48 = vld [vmem:[#allocation7 + $0x38] sm:$0xff]   ;;  %v1516_v51 = vld [vmem:[#allocation7 + $0x20] sm:$0xff]   ;;  %v1518_v53 = vld [vmem:[#allocation7 + $0x10] sm:$0xff]  }
  0x62   : > { %v1517_v52 = vld [vmem:[#allocation7 + $0x18] sm:$0xff]   ;;  %v1519_v54 = vld [vmem:[#allocation7 + $0x8] sm:$0xff]   ;;  %v1520_v55 = vld [vmem:[#allocation7] sm:$0xff]  }
  0x63   : > { %v1239_v3 = vld [vmem:[#allocation6] ss:$0 sm:$0xff] }
  0x64   : > { %1306 = vmatpush3.bf16.msra.mxu0 %v1485_v5  ;;  %1322 = vmatpush3.bf16.msra.mxu1 %v1497_v10  ;;  %v988_v10 = vld [vmem:[%s1961_s8] sm:$0xff] }
  0x65   : > { %1307 = vmatprep.subr.bf16.mxu0 %v1695_v0  ;;  %1323 = vmatprep.subr.bf16.mxu1 %v1695_v0 }
  0x68   : > { %1308 = vmatpush3.bf16.msra.mxu0 %v1486_v7  ;;  %1324 = vmatpush3.bf16.msra.mxu1 %v1499_v18 }
  0x69   : > { %1309 = vmatprep.subr.bf16.mxu0 %v1695_v0  ;;  %1325 = vmatprep.subr.bf16.mxu1 %v1695_v0 }
  0x6c   : > { %1310 = vmatpush3.bf16.msra.mxu0 %v1487_v9  ;;  %1326 = vmatpush3.bf16.msra.mxu1 %v1501_v20 }
  0x6d   : > { %1335 = vmatprep.subr.bf16.mxu0 %v1695_v0  ;;  %1327 = vmatprep.subr.bf16.mxu1 %v1695_v0 }
  0x6f   : > { %1312 = vmatmul.mubr.msk.bf16.vlgmr.msra.gmra.mxu0 %vm483_vm1, %v1488_v11  ;;  %v1697_v11 = vmov 0  }
  0x70   : > { %1336 = vmatpush3.bf16.msra.mxu0 %v1489_v12  ;;  %1351 = vmatprep.mubr.msk.bf16.mxu0 %vm1696_vm0, %v1695_v0  ;;  %v989_v12 = vld [vmem:[%s1961_s8 + $0x8] sm:$0xff] }
  0x71   : > { %1337 = vmatprep.subr.bf16.mxu0 %v1695_v0  ;;  %1328 = vmatpush3.bf16.msra.mxu1 %v1503_v22 }
  0x72   : > { %1329 = vmatprep.subr.bf16.mxu1 %v1695_v0  ;;  %1481 = vset.pattern.permute.xlu0 %v1697_v11 }
  0x73   : > { %992 = vperm.xlu0 %1481, %v988_v10  }
  0x74   : > { %1338 = vmatpush3.bf16.msra.mxu0 %v1490_v13  ;;  %v1240_v13 = vld [vmem:[#allocation9] ss:$0 sm:$0xff] }
  0x75   : > { %1339 = vmatprep.subr.bf16.mxu0 %v1695_v0  ;;  %1330 = vmatpush3.bf16.msra.mxu1 %v1504_v23 }
  0x76   : > { %1355 = vmatprep.subr.bf16.mxu1 %v1695_v0 }
  0x77   : > { %997 = vperm.xlu0 %1481, %v989_v12  }
  0x78   : > { %1340 = vmatpush3.bf16.msra.mxu0 %v1492_v14 }
  0x79   : > { %1341 = vmatprep.subr.bf16.mxu0 %v1695_v0 }
  0x7c   : > { %1342 = vmatpush3.bf16.msra.mxu0 %v1494_v15 }
  0x7d   : > { %1343 = vmatprep.subr.bf16.mxu0 %v1695_v0 }
  0x80   : > { %1344 = vmatpush3.bf16.msra.mxu0 %v1496_v16 }
  0x81   : > { %1345 = vmatprep.subr.bf16.mxu0 %v1695_v0 }
  0x84   : > { %1346 = vmatpush3.bf16.msra.mxu0 %v1498_v17 }
  0x85   : > { %1347 = vmatprep.subr.bf16.mxu0 %v1695_v0 }
  0x88   : > { %1348 = vmatpush3.bf16.msra.mxu0 %v1500_v19 }
  0x89   : > { %1349 = vmatprep.subr.bf16.mxu0 %v1695_v0 }
  0x8c   : > { %1350 = vmatpush3.bf16.msra.mxu0 %v1502_v21 }
  0x8d   : > { %1375 = vmatprep.subr.bf16.mxu0 %v1695_v0 }
 0x12f   : > { %v521_v25 = vpop.f32.mrf.mxu0 }
 0x130   : > { %v1896_v27 = vadd.f32 %v1206_v24, %v521_v25 }
 0x131   : > { %v1313_v26 = vpop.f32.mrf.mxu0 }
 0x132   : > { %v528_v31 = vmax.f32 %v1896_v27, 0.0 }
 0x133   : > { %v524_v28 = vpop.f32.mrf.mxu0 }
 0x134   : > { %v1898_v29 = vadd.f32 %v1206_v24, %v524_v28 }
 0x135   : > { %v1314_v30 = vpop.f32.mrf.mxu0 }
 0x136   : > { %v529_v32 = vmax.f32 %v1898_v29, 0.0 }
 0x138   : > { %v530_v33 = vpack.c.bf16 %v529_v32, %v528_v31 }
 0x13a   : > { %1352 = vmatmul.mubr.bf16.vlgmr.msra.gmra.mxu0 %v530_v33  ;;  %v565_v34 = vshrl.u32 %v530_v33, 16  ;;  %v568_v35 = vshll.u32 %v530_v33, 16  ;;  %v767_v47 = vrot.slane %v530_v33, 3  ;;  %v1521_v33 = vld [vmem:[%s1960_s7] sm:$0xff]  }
 0x13b   : > { %1391 = vmatprep.mubr.msk.bf16.mxu0 %vm1696_vm0, %v1695_v0  ;;  %1376 = vmatpush3.bf16.msra.mxu0 %v1513_v48 }
 0x13c   : > { %v567_v36 = vrot.slane %v565_v34, 1  ;;  %v570_v37 = vrot.slane %v568_v35, 2  ;;  %1377 = vmatprep.subr.bf16.mxu0 %v1695_v0  ;;  %v993_v34 = vpop.permute.xlu0 %992 }
 0x13e   : > { %v571_v39 = vor.u32 %v570_v37, %v567_v36 }
 0x13f   : > { %1378 = vmatpush3.bf16.msra.mxu0 %v1514_v49 }
 0x140   : > { %1332 = vmatmul.mubr.bf16.vlgmr.msra.gmra.mxu1 %v571_v39  ;;  %1379 = vmatprep.subr.bf16.mxu0 %v1695_v0 }
 0x141   : > { %1356 = vmatpush3.bf16.msra.mxu1 %v1505_v38  ;;  %1371 = vmatprep.mubr.msk.bf16.mxu1 %vm1696_vm0, %v1695_v0 }
 0x142   : > { %1357 = vmatprep.subr.bf16.mxu1 %v1695_v0 }
 0x143   : > { %1380 = vmatpush3.bf16.msra.mxu0 %v1515_v50 }
 0x144   : > { %1381 = vmatprep.subr.bf16.mxu0 %v1695_v0 }
 0x145   : > { %1358 = vmatpush3.bf16.msra.mxu1 %v1506_v40 }
 0x146   : > { %1359 = vmatprep.subr.bf16.mxu1 %v1695_v0 }
 0x147   : > { %1382 = vmatpush3.bf16.msra.mxu0 %v1516_v51 }
 0x148   : > { %1383 = vmatprep.subr.bf16.mxu0 %v1695_v0 }
 0x149   : > { %1360 = vmatpush3.bf16.msra.mxu1 %v1507_v41 }
 0x14a   : > { %1361 = vmatprep.subr.bf16.mxu1 %v1695_v0 }
 0x14b   : > { %1384 = vmatpush3.bf16.msra.mxu0 %v1517_v52 }
 0x14c   : > { %1385 = vmatprep.subr.bf16.mxu0 %v1695_v0 }
 0x14d   : > { %1362 = vmatpush3.bf16.msra.mxu1 %v1508_v42 }
 0x14e   : > { %1363 = vmatprep.subr.bf16.mxu1 %v1695_v0 }
 0x14f   : > { %1386 = vmatpush3.bf16.msra.mxu0 %v1518_v53 }
 0x150   : > { %1387 = vmatprep.subr.bf16.mxu0 %v1695_v0 }
 0x151   : > { %1364 = vmatpush3.bf16.msra.mxu1 %v1509_v43 }
 0x152   : > { %1365 = vmatprep.subr.bf16.mxu1 %v1695_v0 }
 0x153   : > { %1388 = vmatpush3.bf16.msra.mxu0 %v1519_v54 }
 0x154   : > { %1389 = vmatprep.subr.bf16.mxu0 %v1695_v0 }
 0x155   : > { %1366 = vmatpush3.bf16.msra.mxu1 %v1510_v44 }
 0x156   : > { %1367 = vmatprep.subr.bf16.mxu1 %v1695_v0 }
 0x157   : > { %1390 = vmatpush3.bf16.msra.mxu0 %v1520_v55 }
 0x159   : > { %1368 = vmatpush3.bf16.msra.mxu1 %v1511_v45 }
 0x15a   : > { %1369 = vmatprep.subr.bf16.mxu1 %v1695_v0 }
 0x15d   : > { %1370 = vmatpush3.bf16.msra.mxu1 %v1512_v46 }
 0x15e   : > { %1395 = vmatprep.subr.bf16.mxu1 %v1695_v0 }
 0x160   : > { %1372 = vmatmul.mubr.bf16.vlgmr.msra.gmra.mxu1 %v767_v47 }
 0x161   : > { %1397 = vmatprep.mubr.msk.bf16.mxu1 %vm1696_vm0, %v1695_v0 }
 0x1fa   : > { %v743_v56 = vpop.f32.mrf.mxu0 }
 0x1fc   : > { %v1353_v57 = vpop.f32.mrf.mxu0 }
 0x1fe   : > { %v746_v58 = vpop.f32.mrf.mxu0 }
 0x200   : > { %v655_v59 = vpop.f32.mrf.mxu1  ;;  %v1354_v60 = vpop.f32.mrf.mxu0 }
 0x201   : > { %v744_v1 = vadd.f32 %v743_v56, %v655_v59 }
 0x202   : > { %v1333_v61 = vpop.f32.mrf.mxu1 }
 0x204   : > { %v658_v62 = vpop.f32.mrf.mxu1 }
 0x206   : > { %v1334_v63 = vpop.f32.mrf.mxu1 }
 0x220   : > { %v851_v2 = vpop.f32.mrf.mxu1 }
 0x221   : > { %v857_v4 = vadd.f32 %v851_v2, %v744_v1 }
 0x222   : > { %v1373_v5 = vpop.f32.mrf.mxu1 }
 0x223   : > { %v865_v6 = vadd.f32 %v1239_v3, %v857_v4 }
 0x224   : > { %v854_v7 = vpop.f32.mrf.mxu1 }
 0x225   : > { %v866_v8 = vmax.f32 %v865_v6, 0.0 }
 0x226   : > { %v1374_v9 = vpop.f32.mrf.mxu1 }
 0x227   : > { %v867_v0 = vpack.c.bf16 %v866_v8, %v866_v8 }
 0x229   : > { %1392 = vmatmul.mubr.bf16.vlgmr.msra.gmra.mxu0 %v867_v0 }
 0x2e9   : > { %v973_v14 = vpop.f32.mrf.mxu0 }
 0x2ea   : > { %v974_v15 = vadd.f32 %v1240_v13, %v973_v14 }
 0x2eb   : > { %v1393_v16 = vpop.f32.mrf.mxu0 }
 0x2ec   : > { %v979_v17 = vmax.f32 %v974_v15, 0.0 }
 0x2ed   : > { %v976_v18 = vpop.f32.mrf.mxu0 }
 0x2ee   : > { %v981_v19 = vrot.slane %v979_v17, 5 }
 0x2ef   : > { %v1394_v20 = vpop.f32.mrf.mxu0 }
 0x2f0   : > { %v983_v21 = vadd.f32 %v981_v19, %v528_v31  ;;  %v984_v22 = vadd.f32 %v981_v19, %v529_v32  ;;  %v998_v32 = vpop.permute.xlu0 %997 }
 0x2f2   : > { %v987_v23 = vpack.c.bf16 %v984_v22, %v983_v21 }
 0x2f4   : > { %v1007_v24 = vshrl.u32 %v987_v23, 16  ;;  %v1010_v25 = vshll.u32 %v987_v23, 16 }
 0x2f6   : > { %v1009_v26 = vrot.slane %v1007_v24, 1  ;;  %v1012_v28 = vrot.slane %v1010_v25, 2 }
 0x2f8   : > { %v1013_v30 = vor.u32 %v1012_v28, %v1009_v26 }
 0x2fa   : > { %1396 = vmatpush3.bf16.xpose.msra.mxu1 %v1013_v30 }
 0x301   : > { %1398 = vmatmul.mubr.bf16.vlgmr.msra.gmra.mxu1 %v1521_v33 }
 0x3c1   : > { %v1049_v27 = vpop.f32.mrf.mxu1 }
 0x3c2   : > { %v1050_v29 = vadd.f32 %v1049_v27, %v993_v34 }
 0x3c3   : > { %v1399_v31 = vpop.f32.mrf.mxu1 }
 0x3c4   : > { %1057 = vst.msk [vmem:[%s419_s26] sm:$0xff] %vm1056_vm2, %v1050_v29 }
 0x3c5   : > { %v1052_v35 = vpop.f32.mrf.mxu1 }
 0x3c6   : > { %v1053_v36 = vadd.f32 %v1052_v35, %v998_v32 }
 0x3c7   : > { %v1400_v37 = vpop.f32.mrf.mxu1 }
 0x3c8   : > { %1058 = vst.msk [vmem:[%s419_s26 + $0x8] sm:$0xff] %vm1056_vm2, %v1053_v36 }
 0x3c9 PF: > { %s22_s11 = sadd.s32 1, %s1686_s11   ;;  %s1970_s30 = smov %s1682_s10 }
 0x3ca   : > { %p19_p5 = scmp.ge.s32.totalorder %s22_s11, 4   ;;  %s1971_s10 = smov %s1973_s20 }
 0x3cc   :  { %21 = sbr.rel (!%p19_p5) target bundleno = 4 (0x4), region = 109 }
 0x3d1   :  { %1086 = vsyncpa [#allocation3], 1 }
 0x3d2   :  { %1088 = vsyncpa [#allocation3 + $0x1], 1 }
 0x3d3   :  { %1089 = vsyncpa [#allocation5], 1 }
 0x3d4   :  { %1090 = vsyncpa [#allocation8], 1 }

</bundles_post_ra>
